<compile_context>
chip_gen: v5e
topology: v5e:2x2
jax: 0.10.0
libtpu: 0.0.40
codegen_flags: <defaults>
</compile_context>

<pallas_src>
import math

import jax
import jax.numpy as jnp
from jax.experimental import pallas as pl
from jax.experimental.pallas import tpu as pltpu

HIDDEN = 32      # hidden size of the stand-in diffusion model
EMB_DIM = 8      # sincos embedding width for timestep / guidance


# ---------------------------------------------------------------------------
# ModelSamplingFlux (schedule math, plain JAX / python glue)
# ---------------------------------------------------------------------------
def flux_time_shift(mu, sigma, t):
    return math.exp(mu) / (math.exp(mu) + (1.0 / t - 1.0) ** sigma)


class ModelSamplingFlux:
    def __init__(self, shift=1.15, timesteps=10000):
        self.shift = shift
        ts = jnp.arange(1, timesteps + 1, dtype=jnp.float32) / timesteps
        self.sigmas = flux_time_shift(shift, 1.0, ts)

    @property
    def sigma_min(self):
        return self.sigmas[0]

    @property
    def sigma_max(self):
        return self.sigmas[-1]

    def timestep(self, sigma):
        return sigma

    # calculate_denoised (x - model_output * sigma) is fused into the kernel.


# Precomputed once (review: don't rebuild the freq table / constant guidance
# embedding on every call).
_FREQS = jnp.exp(
    -math.log(10000.0) * jnp.arange(EMB_DIM // 2, dtype=jnp.float32) / (EMB_DIM // 2)
)


def _sincos_embed(t):
    args = t.astype(jnp.float32)[:, None] * _FREQS[None, :] * 1000.0
    return jnp.concatenate([jnp.cos(args), jnp.sin(args)], axis=-1)


_GUIDANCE_EMB = _sincos_embed(jnp.full((1,), 3.5, dtype=jnp.float32))  # (1, EMB_DIM)


# ---------------------------------------------------------------------------
# In-kernel helpers (lower to exp/mul/add/div/select only)
# ---------------------------------------------------------------------------
def _erf(z):
    # Abramowitz & Stegun 7.1.26, |error| < 1.5e-7.
    az = jnp.abs(z)
    t = 1.0 / (1.0 + 0.3275911 * az)
    poly = t * (0.254829592 + t * (-0.284496736 + t * (1.421413741
               + t * (-1.453152027 + t * 1.061405429))))
    e = 1.0 - poly * jnp.exp(-az * az)
    return jnp.where(z >= 0.0, e, -e)


def _gelu_exact(x):
    # PyTorch nn.GELU default (exact erf form), not the tanh approximation.
    return 0.5 * x * (1.0 + _erf(x * 0.7071067811865476))


# ---------------------------------------------------------------------------
# Pallas kernel: stand-in diffusion model + calculate_denoised, whole batch in
# one invocation (no grid, one MXU matmul per layer).
# ---------------------------------------------------------------------------
def flux_apply_kernel(sigma_ref, x_ref, cond_ref, wc_ref, w1_ref, w2_ref, out_ref):
    """
    sigma_ref: (B,)          f32  SMEM   per-batch sigma
    x_ref:     (B*C, L)      f32  VMEM   lane-dense latents (L = H*W)
    cond_ref:  (1, B*COND)   f32  VMEM   flattened conditioning vectors
    wc_ref:    (B*H, B*COND) f32  VMEM   kron(I_B, w_cond^T)
    w1_ref:    (B*H, B*C)    bf16 VMEM   kron(I_B, w1^T)
    w2_ref:    (B*C, B*H)    bf16 VMEM   kron(I_B, w2^T)
    out_ref:   (B*C, L)      x.dtype
    """
    B = sigma_ref.shape[0]
    BC = x_ref.shape[0]
    C = BC // B

    x = x_ref[...]                                    # (B*C, L) f32
    x_bf = x.astype(jnp.bfloat16)                     # single hoisted MXU cast

    # conditioning bias tanh(cond @ w_cond), produced directly as a (B*H, 1)
    # column via VPU broadcast-multiply + lane reduction (no MXU round trip).
    vec = jnp.tanh(
        jnp.sum(wc_ref[...] * cond_ref[...], axis=-1, keepdims=True))  # (B*H, 1)

    # projection 1: ONE MXU issue for the whole batch (block-diag over B)
    h = jnp.dot(w1_ref[...], x_bf, preferred_element_type=jnp.float32)  # (B*H, L)
    h = _gelu_exact(h + vec)                          # f32 activations (v5e-safe)

    # projection 2: ONE MXU issue
    mo = jnp.dot(w2_ref[...], h.astype(jnp.bfloat16),
                 preferred_element_type=jnp.float32)  # (B*C, L)
    mo = mo.astype(x_ref.dtype)                       # model_output.to(x.dtype)

    # calculate_denoised: x - model_output * sigma   (per-batch sigma broadcast)
    row = jax.lax.broadcasted_iota(jnp.int32, (BC, 1), 0)
    sig_col = jnp.zeros((BC, 1), dtype=jnp.float32)
    for b in range(B):                                # tiny static unroll (B=2)
        sig_col = jnp.where((row >= b * C) & (row < (b + 1) * C),
                            sigma_ref[b], sig_col)
    out_ref[...] = (x - mo * sig_col).astype(out_ref.dtype)


# ---------------------------------------------------------------------------
# Wrapper (== BaseModel.apply_model / forward)
# ---------------------------------------------------------------------------
def _build_cond(sigma, c_crossattn, y):
    """Conditioning vectors (B, COND_DIM) ~ Flux time_in/guidance_in/vector_in glue."""
    B = sigma.shape[0]
    timestep = sigma.astype(jnp.float32)              # model_sampling.timestep(sigma)
    return jnp.concatenate(
        [_sincos_embed(timestep),
         jnp.broadcast_to(_GUIDANCE_EMB, (B, EMB_DIM)),   # guidance == 3.5 (const)
         y.astype(jnp.float32),
         c_crossattn.astype(jnp.float32).mean(axis=1)],
        axis=-1)


def flux_apply_model(x, sigma, c_crossattn, y, params):
    """x: [B, C, H, W] (NCHW, like PyTorch); sigma: [B]; c_crossattn: [B, T, Dctx]; y: [B, Dy]."""
    B, C, H, W = x.shape
    L = H * W
    # NCHW -> (B*C, L): contiguous reshape only — no transpose, no extra HBM pass.
    x_flat = x.reshape(B * C, L)

    cond = _build_cond(sigma, c_crossattn, y)          # (B, COND_DIM) f32
    cond_row = cond.reshape(1, B * cond.shape[-1])     # (1, B*COND) batch-major

    out_flat = pl.pallas_call(
        flux_apply_kernel,
        out_shape=jax.ShapeDtypeStruct((B * C, L), x.dtype),
        in_specs=[
            pl.BlockSpec(memory_space=pltpu.MemorySpace.SMEM),   # sigma (B,)
            pl.BlockSpec(memory_space=pltpu.MemorySpace.VMEM),   # x (B*C, L)
            pl.BlockSpec(memory_space=pltpu.MemorySpace.VMEM),   # cond (1, B*COND)
            pl.BlockSpec(memory_space=pltpu.MemorySpace.VMEM),   # wc_blk
            pl.BlockSpec(memory_space=pltpu.MemorySpace.VMEM),   # w1_blk
            pl.BlockSpec(memory_space=pltpu.MemorySpace.VMEM),   # w2_blk
        ],
        out_specs=pl.BlockSpec(memory_space=pltpu.MemorySpace.VMEM),
        # TODO(synk): when real Flux blocks replace the stand-in, add a
        # core-parallel grid axis (v7x has 2 TensorCores) and set
        # pltpu.CompilerParams(vmem_limit_bytes=...) for v7x's 64 MiB VMEM.
    )(sigma.astype(jnp.float32), x_flat, cond_row,
      params["wc_blk"], params["w1_blk"], params["w2_blk"])

    # back to NCHW (contiguous reshape, no transpose)
    return out_flat.reshape(B, C, H, W)


def init_params(key, batch, channels, hidden, cond_dim):
    """Stand-in diffusion-model weights, stored pre-transposed and
    pre-block-diagonalised over the batch (kron(I_B, W^T)) so the kernel needs
    exactly one matmul per layer and the wrapper does no per-call transposes."""
    k1, k2, k3 = jax.random.split(key, 3)
    w1 = jax.random.normal(k1, (channels, hidden), jnp.float32) * 0.02
    w2 = jax.random.normal(k2, (hidden, channels), jnp.float32) * 0.02
    w_cond = jax.random.normal(k3, (cond_dim, hidden), jnp.float32) * 0.02
    eye = jnp.eye(batch, dtype=jnp.float32)
    return {
        "w1_blk": jnp.kron(eye, w1.T).astype(jnp.bfloat16),   # (B*H, B*C)
        "w2_blk": jnp.kron(eye, w2.T).astype(jnp.bfloat16),   # (B*C, B*H)
        "wc_blk": jnp.kron(eye, w_cond.T),                    # (B*H, B*COND) f32
    }


def flux_apply_model_ref(x, sigma, c_crossattn, y, params):
    """Plain-JAX mirror of the kernel math (same bf16 MXU casts, exact-erf GELU)."""
    B, C, H, W = x.shape
    L = H * W
    x_flat = x.reshape(B * C, L)
    cond_row = _build_cond(sigma, c_crossattn, y).reshape(1, -1)
    vec = jnp.tanh(jnp.sum(params["wc_blk"] * cond_row, axis=-1, keepdims=True))
    h = jnp.dot(params["w1_blk"], x_flat.astype(jnp.bfloat16),
                preferred_element_type=jnp.float32)
    h = jax.nn.gelu(h + vec, approximate=False)
    mo = jnp.dot(params["w2_blk"], h.astype(jnp.bfloat16),
                 preferred_element_type=jnp.float32).astype(x.dtype)
    sig_col = jnp.repeat(sigma.astype(jnp.float32), C)[:, None]
    return (x_flat - mo * sig_col).astype(x.dtype).reshape(B, C, H, W)


# ---------------------------------------------------------------------------
if __name__ == "__main__":
    key = jax.random.PRNGKey(0)
    kx, kc, ky, kp = jax.random.split(key, 4)

    B, C, H, W = 2, 4, 16, 16
    T, CTX_DIM, Y_DIM = 8, 32, 16
    COND_DIM = EMB_DIM + EMB_DIM + Y_DIM + CTX_DIM    # 64

    x = jax.random.normal(kx, (B, C, H, W), dtype=jnp.float32)
    c_crossattn = jax.random.normal(kc, (B, T, CTX_DIM), dtype=jnp.float32)
    y = jax.random.normal(ky, (B, Y_DIM), dtype=jnp.float32)

    model_sampling = ModelSamplingFlux(shift=1.15)
    sigma = jnp.stack([model_sampling.sigmas[999], model_sampling.sigmas[4999]])  # [B]

    params = init_params(kp, B, C, HIDDEN, COND_DIM)

    denoised = flux_apply_model(x, sigma, c_crossattn, y, params)
    jax.block_until_ready(denoised)

    assert denoised.shape == x.shape and denoised.dtype == x.dtype

    ref = flux_apply_model_ref(x, sigma, c_crossattn, y, params)
    assert bool(jnp.allclose(denoised, ref, atol=2e-3, rtol=2e-3)), (
        "max |diff| = %e" % float(jnp.max(jnp.abs(denoised - ref))))

    print("KERNEL_OK")
</pallas_src>

<mosaic_0001>
module attributes {stable_mosaic.version = 11 : i64} {
  func.func @flux_apply_kernel(%arg0: memref<2xf32, #tpu.memory_space<smem>>, %arg1: memref<8x256xf32, #tpu.memory_space<vmem>>, %arg2: memref<1x128xf32, #tpu.memory_space<vmem>>, %arg3: memref<64x128xf32, #tpu.memory_space<vmem>>, %arg4: memref<64x8xbf16, #tpu.memory_space<vmem>>, %arg5: memref<8x64xbf16, #tpu.memory_space<vmem>>, %arg6: memref<8x256xf32, #tpu.memory_space<vmem>>) attributes {dimension_semantics = [], scalar_prefetch = 0 : i64, scratch_operands = 0 : i64, tpu.core_type = #tpu.core_type<tc>} {
    %c0 = arith.constant 0 : index
    %c0_0 = arith.constant 0 : index
    %0 = vector.load %arg1[%c0, %c0_0] : memref<8x256xf32, #tpu.memory_space<vmem>>, vector<8x256xf32>
    %1 = arith.truncf %0 : vector<8x256xf32> to vector<8x256xbf16>
    %c0_1 = arith.constant 0 : index
    %c0_2 = arith.constant 0 : index
    %2 = vector.load %arg3[%c0_1, %c0_2] : memref<64x128xf32, #tpu.memory_space<vmem>>, vector<64x128xf32>
    %c0_3 = arith.constant 0 : index
    %c0_4 = arith.constant 0 : index
    %3 = vector.load %arg2[%c0_3, %c0_4] : memref<1x128xf32, #tpu.memory_space<vmem>>, vector<1x128xf32>
    %4 = vector.broadcast %3 : vector<1x128xf32> to vector<64x128xf32>
    %5 = arith.mulf %2, %4 : vector<64x128xf32>
    %cst = arith.constant dense<0.000000e+00> : vector<64xf32>
    %6 = vector.multi_reduction <add>, %5, %cst [1] : vector<64x128xf32> to vector<64xf32>
    %7 = vector.shape_cast %6 : vector<64xf32> to vector<64x1xf32>
    %8 = math.tanh %7 : vector<64x1xf32>
    %c0_5 = arith.constant 0 : index
    %c0_6 = arith.constant 0 : index
    %9 = vector.load %arg4[%c0_5, %c0_6] : memref<64x8xbf16, #tpu.memory_space<vmem>>, vector<64x8xbf16>
    %cst_7 = arith.constant dense<0.000000e+00> : vector<64x256xf32>
    %10 = tpu.matmul %9, %1, %cst_7 {dimension_numbers = #tpu.dot_dimension_numbers<[1], [0], [0], [1], [0, 0, 1, 1], [], []>} : vector<64x8xbf16>, vector<8x256xbf16>, vector<64x256xf32> -> vector<64x256xf32>
    %11 = vector.broadcast %8 : vector<64x1xf32> to vector<64x256xf32>
    %12 = arith.addf %10, %11 : vector<64x256xf32>
    %cst_8 = arith.constant 5.000000e-01 : f32
    %13 = vector.broadcast %cst_8 : f32 to vector<64x256xf32>
    %14 = arith.mulf %13, %12 : vector<64x256xf32>
    %cst_9 = arith.constant 0.707106769 : f32
    %15 = vector.broadcast %cst_9 : f32 to vector<64x256xf32>
    %16 = arith.mulf %12, %15 : vector<64x256xf32>
    %17 = math.absf %16 : vector<64x256xf32>
    %cst_10 = arith.constant 0.327591091 : f32
    %18 = vector.broadcast %cst_10 : f32 to vector<64x256xf32>
    %19 = arith.mulf %18, %17 : vector<64x256xf32>
    %cst_11 = arith.constant 1.000000e+00 : f32
    %20 = vector.broadcast %cst_11 : f32 to vector<64x256xf32>
    %21 = arith.addf %20, %19 : vector<64x256xf32>
    %cst_12 = arith.constant 1.000000e+00 : f32
    %22 = vector.broadcast %cst_12 : f32 to vector<64x256xf32>
    %23 = arith.divf %22, %21 : vector<64x256xf32>
    %cst_13 = arith.constant 1.06140542 : f32
    %24 = vector.broadcast %cst_13 : f32 to vector<64x256xf32>
    %25 = arith.mulf %23, %24 : vector<64x256xf32>
    %cst_14 = arith.constant -1.45315206 : f32
    %26 = vector.broadcast %cst_14 : f32 to vector<64x256xf32>
    %27 = arith.addf %26, %25 : vector<64x256xf32>
    %28 = arith.mulf %23, %27 : vector<64x256xf32>
    %cst_15 = arith.constant 1.42141378 : f32
    %29 = vector.broadcast %cst_15 : f32 to vector<64x256xf32>
    %30 = arith.addf %29, %28 : vector<64x256xf32>
    %31 = arith.mulf %23, %30 : vector<64x256xf32>
    %cst_16 = arith.constant -0.284496725 : f32
    %32 = vector.broadcast %cst_16 : f32 to vector<64x256xf32>
    %33 = arith.addf %32, %31 : vector<64x256xf32>
    %34 = arith.mulf %23, %33 : vector<64x256xf32>
    %cst_17 = arith.constant 0.254829586 : f32
    %35 = vector.broadcast %cst_17 : f32 to vector<64x256xf32>
    %36 = arith.addf %35, %34 : vector<64x256xf32>
    %37 = arith.mulf %23, %36 : vector<64x256xf32>
    %cst_18 = arith.constant 0.000000e+00 : f32
    %38 = vector.broadcast %cst_18 : f32 to vector<64x256xf32>
    %39 = arith.subf %38, %17 : vector<64x256xf32>
    %40 = arith.mulf %39, %17 : vector<64x256xf32>
    %41 = math.exp %40 : vector<64x256xf32>
    %42 = arith.mulf %37, %41 : vector<64x256xf32>
    %cst_19 = arith.constant 1.000000e+00 : f32
    %43 = vector.broadcast %cst_19 : f32 to vector<64x256xf32>
    %44 = arith.subf %43, %42 : vector<64x256xf32>
    %cst_20 = arith.constant 0.000000e+00 : f32
    %45 = vector.broadcast %cst_20 : f32 to vector<64x256xf32>
    %46 = arith.cmpf oge, %16, %45 : vector<64x256xf32>
    %cst_21 = arith.constant 0.000000e+00 : f32
    %47 = vector.broadcast %cst_21 : f32 to vector<64x256xf32>
    %48 = arith.subf %47, %44 : vector<64x256xf32>
    %49 = arith.select %46, %44, %48 : vector<64x256xi1>, vector<64x256xf32>
    %cst_22 = arith.constant 1.000000e+00 : f32
    %50 = vector.broadcast %cst_22 : f32 to vector<64x256xf32>
    %51 = arith.addf %50, %49 : vector<64x256xf32>
    %52 = arith.mulf %14, %51 : vector<64x256xf32>
    %c0_23 = arith.constant 0 : index
    %c0_24 = arith.constant 0 : index
    %53 = vector.load %arg5[%c0_23, %c0_24] : memref<8x64xbf16, #tpu.memory_space<vmem>>, vector<8x64xbf16>
    %54 = arith.truncf %52 : vector<64x256xf32> to vector<64x256xbf16>
    %cst_25 = arith.constant dense<0.000000e+00> : vector<8x256xf32>
    %55 = tpu.matmul %53, %54, %cst_25 {dimension_numbers = #tpu.dot_dimension_numbers<[1], [0], [0], [1], [0, 0, 1, 1], [], []>} : vector<8x64xbf16>, vector<64x256xbf16>, vector<8x256xf32> -> vector<8x256xf32>
    %56 = tpu.iota {dimensions = array<i32: 0>} : vector<8x1xi32>
    %cst_26 = arith.constant 0.000000e+00 : f32
    %57 = vector.broadcast %cst_26 : f32 to vector<8x1xf32>
    %c0_i32 = arith.constant 0 : i32
    %58 = vector.broadcast %c0_i32 : i32 to vector<8x1xi32>
    %59 = arith.cmpi sge, %56, %58 : vector<8x1xi32>
    %c4_i32 = arith.constant 4 : i32
    %60 = vector.broadcast %c4_i32 : i32 to vector<8x1xi32>
    %61 = arith.cmpi slt, %56, %60 : vector<8x1xi32>
    %62 = arith.andi %59, %61 : vector<8x1xi1>
    %c0_27 = arith.constant 0 : index
    %63 = memref.load %arg0[%c0_27] : memref<2xf32, #tpu.memory_space<smem>>
    %64 = vector.broadcast %63 : f32 to vector<8x1xf32>
    %65 = arith.select %62, %64, %57 : vector<8x1xi1>, vector<8x1xf32>
    %c4_i32_28 = arith.constant 4 : i32
    %66 = vector.broadcast %c4_i32_28 : i32 to vector<8x1xi32>
    %67 = arith.cmpi sge, %56, %66 : vector<8x1xi32>
    %c8_i32 = arith.constant 8 : i32
    %68 = vector.broadcast %c8_i32 : i32 to vector<8x1xi32>
    %69 = arith.cmpi slt, %56, %68 : vector<8x1xi32>
    %70 = arith.andi %67, %69 : vector<8x1xi1>
    %c1 = arith.constant 1 : index
    %71 = memref.load %arg0[%c1] : memref<2xf32, #tpu.memory_space<smem>>
    %72 = vector.broadcast %71 : f32 to vector<8x1xf32>
    %73 = arith.select %70, %72, %65 : vector<8x1xi1>, vector<8x1xf32>
    %74 = vector.broadcast %73 : vector<8x1xf32> to vector<8x256xf32>
    %75 = arith.mulf %55, %74 : vector<8x256xf32>
    %76 = arith.subf %0, %75 : vector<8x256xf32>
    %c0_29 = arith.constant 0 : index
    %c0_30 = arith.constant 0 : index
    %77 = vector.load %arg6[%c0_29, %c0_30] : memref<8x256xf32, #tpu.memory_space<vmem>>, vector<8x256xf32>
    tpu.vector_store %arg6[%c0_29, %c0_30], %76 {strides = array<i32>} : memref<8x256xf32, #tpu.memory_space<vmem>>, vector<8x256xf32>,
    return
  }
}

</mosaic_0001>

<bundles_post_ra>
// kernel: tpu_custom_call.1
= control target key start
LH: loop header
LB: loop body
LE: loop exit
PB: predicated region body
PF: predicated region fallthrough
CT: control target
= control target key end

     0   :  { %11 = vsyncpa [#allocation5], 0  ;;  %s1990_s0 = inlined_call_operand.vmem [shape: f32[2], index: 0, kind: input, shape index: {}]   ;;  %s1991_s1 = inlined_call_operand.vmem [shape: f32[8,256], index: 1, kind: input, shape index: {}]   ;;  %s1992_s2 = inlined_call_operand.vmem [shape: f32[1,128], index: 2, kind: input, shape index: {}]   ;;  %s1993_s3 = inlined_call_operand.hbm [shape: f32[64,128], index: 3, kind: input, shape index: {}]   ;;  %s1994_s4 = inlined_call_operand.vmem [shape: bf16[64,8], index: 4, kind: input, shape index: {}]   ;;  %s1995_s5 = inlined_call_operand.vmem [shape: bf16[8,64], index: 5, kind: input, shape index: {}]   ;;  %s1996_s6 = inlined_call_operand.hbm [shape: f32[8,256], index: 6, kind: output, shape index: {}]  }
   0x1   :  { %12 = vsyncpa [#allocation3], 0 }
   0x2   :  { %13 = vsyncpa [#allocation4], 0  ;;  %s19_s23 = sshll.u32 %s1990_s0, 4  ;;  %s31_s26 = sshll.u32 %s1993_s3, 4  ;;  %s20_s23 = int_to_ptr.vmem [resolvable:$true] %s19_s23  ;;  %s32_s26 = int_to_ptr.hbm [resolvable:$true] %s31_s26 }
   0x3   :  { %s1112_s27 = smov [#allocation2]   ;;  %s1113_s28 = smov [#allocation6]  }
   0x4   :  { %22 = dma.vmem_to_smem %s20_s23, 16, %s1112_s27, [#allocation5]  }
   0x5   :  { %s33_s29 = sshll.u32 %s1113_s28, 4  ;;  %s1114_s30 = smov 128   ;;  %s34_s29 = int_to_ptr.vmem [resolvable:$true] %s33_s29 }
   0x6   :  { %s1115_s7 = smov 8  }
   0x7   :  { %39 = dma.hbm_to_vmem [thread:$0]  %s32_s26, 1024, %s34_s29, [#allocation3], %s1114_s30, %s1114_s30, %s1115_s7  }
   0x8   :  { %1106 = dma.done.wait [#allocation5], 16  }
   0x9   :  { %1107 = vsyncadd [#allocation5], 4294967280 }
   0xa   :  { %1108 = dma.done.wait [#allocation3], 1024  }
   0xb   :  { %1109 = vsyncadd [#allocation3], 4294966272 }
   0xc   :  { %52 = sfence }
   0xd   :  { %v54_v0 = vld [vmem:[%s1991_s1] sm:$0xff]  ;;  %vm143_vm0 = vcmask 1043456   ;;  %v55_v1 = vld [vmem:[%s1991_s1 + $0x8] sm:$0xff]  ;;  %v64_v2 = vld [vmem:[#allocation6 + $0x30] sm:$0xff]  ;;  %vm130_vm1 = vcmask 64512   ;;  %s951_s20 = sld [smem:[#allocation2 + $0x1]] }
   0xe   :  { %v56_v3 = vpack.c.bf16 %v54_v0, %v54_v0  ;;  %v57_v4 = vpack.c.bf16 %v55_v1, %v55_v1  ;;  %v963_v5 = vld [vmem:[%s1992_s2] ss:$0 sm:$0xff]  ;;  %v955_v12 = vld [vmem:[%s1994_s4 + $0x18] sm:$0xff]  ;;  %v60_v13 = vld [vmem:[#allocation6 + $0x10] sm:$0xff]  ;;  %s1116_s23 = smov [#allocation7]   ;;  %s914_s27 = sshll.u32 %s1996_s6, 4  ;;  %s915_s27 = int_to_ptr.hbm [resolvable:$true] %s914_s27 }
   0xf   :  { %v62_v6 = vld [vmem:[#allocation6 + $0x20] sm:$0xff]  ;;  %v76_v9 = vmul.f32 %v963_v5, %v64_v2  ;;  %v72_v14 = vmul.f32 %v963_v5, %v60_v13  ;;  %v65_v15 = vld [vmem:[#allocation6 + $0x38] sm:$0xff]  ;;  %v63_v16 = vld [vmem:[#allocation6 + $0x28] sm:$0xff]  ;;  %s912_s24 = sshll.u32 %s1116_s23, 4  ;;  %s913_s24 = int_to_ptr.vmem [resolvable:$true] %s912_s24 }
  0x10   :  { %v145_v7 = vsel %vm143_vm0, %v56_v3, 0  ;;  %v148_v8 = vsel %vm143_vm0, %v57_v4, 0  ;;  %v74_v10 = vmul.f32 %v963_v5, %v62_v6  ;;  %v952_v11 = vld [vmem:[%s1994_s4] sm:$0xff]  ;;  %v77_v17 = vmul.f32 %v963_v5, %v65_v15  ;;  %v61_v19 = vld [vmem:[#allocation6 + $0x18] sm:$0xff]  ;;  %v59_v21 = vld [vmem:[#allocation6 + $0x8] sm:$0xff] }
  0x11   :  { %157 = vmatpush.bf16.msra.mxu0 %v145_v7  ;;  %956 = vmatpush.bf16.msra.mxu2 %v145_v7  ;;  %v75_v18 = vmul.f32 %v963_v5, %v63_v16  ;;  %v73_v20 = vmul.f32 %v963_v5, %v61_v19  ;;  %v58_v22 = vld [vmem:[#allocation6] sm:$0xff]  ;;  %v71_v23 = vmul.f32 %v963_v5, %v59_v21  ;;  %v953_v25 = vld [vmem:[%s1994_s4 + $0x8] sm:$0xff]  ;;  %v954_v26 = vld [vmem:[%s1994_s4 + $0x10] sm:$0xff] }
  0x12   :  { %186 = vmatpush.bf16.msra.mxu1 %v148_v8  ;;  %957 = vmatpush.bf16.msra.mxu3 %v148_v8  ;;  %v70_v24 = vmul.f32 %v963_v5, %v58_v22 }
  0x13   :  { %90 = vadd.xlane.f32.xlu0 %v76_v9  ;;  %86 = vadd.xlane.f32.xlu1 %v74_v10 }
  0x14   :  { %941 = vmatmul.msk.bf16.vlgmr.msra.gmra.mxu0 %vm130_vm1, %v952_v11  ;;  %944 = vmatmul.msk.bf16.vlgmr.msra.gmra.mxu2 %vm130_vm1, %v955_v12 }
  0x15   :  { %945 = vmatmul.msk.bf16.vlgmr.msra.gmra.mxu1 %vm130_vm1, %v952_v11  ;;  %948 = vmatmul.msk.bf16.vlgmr.msra.gmra.mxu3 %vm130_vm1, %v955_v12 }
  0x16   :  { %82 = vadd.xlane.f32.xlu2 %v72_v14 }
  0x1b   :  { %92 = vadd.xlane.f32.xlu0 %v77_v17  ;;  %88 = vadd.xlane.f32.xlu1 %v75_v18 }
  0x1e   :  { %84 = vadd.xlane.f32.xlu2 %v73_v20 }
  0x23   :  { %80 = vadd.xlane.f32.xlu1 %v71_v23  ;;  %78 = vadd.xlane.f32.xlu0 %v70_v24 }
  0x24   :  { %942 = vmatmul.msk.bf16.gmra.mxu0 %vm130_vm1, %v953_v25 }
  0x25   :  { %946 = vmatmul.msk.bf16.gmra.mxu1 %vm130_vm1, %v953_v25 }
  0x34   :  { %943 = vmatmul.msk.bf16.gmra.mxu0 %vm130_vm1, %v954_v26 }
  0x35   :  { %947 = vmatmul.msk.bf16.gmra.mxu1 %vm130_vm1, %v954_v26 }
  0x86   :  { %v91_v27 = vpop.xlane.xlu0 %90  ;;  %v87_v28 = vpop.xlane.xlu1 %86 }
  0x87   :  { %964 = vtanh.f32 %v91_v27 }
  0x89   :  { %v83_v58 = vpop.xlane.xlu2 %82 }
  0x8d   :  { %v965_v32 = vpop.eup %964 }
  0x8e   :  { %v93_v29 = vpop.xlane.xlu0 %92  ;;  %v1187_v30 = vpop.xlane.xlu1 %88 }
  0x91   :  { %v159_v31 = vpop.f32.mrf.mxu0 }
  0x92   :  { %v188_v38 = vpop.f32.mrf.mxu1 }
  0x96   :  { %v81_v33 = vpop.xlane.xlu1 %80  ;;  %v79_v34 = vpop.xlane.xlu0 %78 }
  0x97   :  { %966 = vtanh.f32 %v81_v33  ;;  %v174_v35 = vpop.f32.mrf.mxu2 }
  0x98   :  { %968 = vtanh.f32 %v79_v34  ;;  %v175_v36 = vadd.f32 %v965_v32, %v174_v35  ;;  %v203_v37 = vpop.f32.mrf.mxu3 }
  0x99   :  { %v204_v39 = vadd.f32 %v965_v32, %v203_v37  ;;  %v161_v45 = vpop.f32.mrf.mxu0  ;;  %970 = vtanh.f32 %v93_v29 }
  0x9a   :  { %v1189_v40 = vmul.f32 0.70710677, %v175_v36  ;;  %v190_v52 = vpop.f32.mrf.mxu1  ;;  %972 = vtanh.f32 %v83_v58  ;;  %v1243_v20 = vmul.f32 0.5, %v175_v36  ;;  %v85_v36 = vpop.xlane.xlu2 %84 }
  0x9b   :  { %v1191_v41 = vmul.f32 0.70710677, %v204_v39  ;;  %v1250_v24 = vmul.f32 0.5, %v204_v39 }
  0x9c   :  { %v252_v44 = vand.u32 2147483647, %v1189_v40 }
  0x9d   :  { %v967_v42 = vpop.eup %966  ;;  %v253_v48 = vand.u32 2147483647, %v1191_v41 }
  0x9e   :  { %v969_v43 = vpop.eup %968  ;;  %v1194_v46 = vadd.f32 %v967_v42, %v161_v45  ;;  %v268_v50 = vmul.f32 0.3275911, %v252_v44  ;;  %v1207_v55 = vadd.f32 %v967_v42, %v190_v52  ;;  %v684_v6 = vsub.f32 0.0, %v252_v44 }
  0x9f   :  { %v1196_v47 = vadd.f32 %v969_v43, %v159_v31  ;;  %v1199_v49 = vadd.f32 %v969_v43, %v188_v38  ;;  %v269_v54 = vmul.f32 0.3275911, %v253_v48  ;;  %v971_v1 = vpop.eup %970  ;;  %v176_v4 = vpop.f32.mrf.mxu2  ;;  %v685_v8 = vsub.f32 0.0, %v253_v48 }
  0xa0   :  { %2040 = vst [vmem:[#allocation11_spill] sm:$0xff] %v1194_v46  ;;  %v1202_v51 = vmul.f32 0.70710677, %v1194_v46  ;;  %v1212_v57 = vadd.f32 1.0, %v268_v50  ;;  %v1219_v62 = vmul.f32 0.70710677, %v1207_v55  ;;  %v205_v7 = vpop.f32.mrf.mxu3  ;;  %v973_v10 = vpop.eup %972  ;;  %v1233_v13 = vadd.f32 %v971_v1, %v176_v4 }
  0xa1   :  { %2041 = vst [vmem:[#allocation12_spill] sm:$0xff] %v1196_v47  ;;  %v1205_v53 = vmul.f32 0.70710677, %v1196_v47  ;;  %v1210_v56 = vmul.f32 0.70710677, %v1199_v49  ;;  %v1216_v61 = vadd.f32 1.0, %v269_v54  ;;  %v164_v14 = vpop.f32.mrf.mxu0  ;;  %v1239_v18 = vadd.f32 %v971_v1, %v205_v7 }
  0xa2   :  { %2042 = vst [vmem:[#allocation13_spill] sm:$0xff] %v1199_v49  ;;  %v242_v59 = vand.u32 2147483647, %v1202_v51  ;;  %974 = vrcp.f32 %v1212_v57  ;;  %v1227_v3 = vand.u32 2147483647, %v1219_v62  ;;  %v700_v21 = vmul.f32 %v684_v6, %v252_v44 }
  0xa3   :  { %2043 = vst [vmem:[#allocation14_spill] sm:$0xff] %v1202_v51  ;;  %v240_v60 = vand.u32 2147483647, %v1205_v53  ;;  %v1222_v63 = vand.u32 2147483647, %v1210_v56  ;;  %976 = vrcp.f32 %v1216_v61  ;;  %v701_v25 = vmul.f32 %v685_v8, %v253_v48 }
  0xa4   :  { %2044 = vst [vmem:[#allocation15_spill] sm:$0xff] %v1205_v53  ;;  %v258_v0 = vmul.f32 0.3275911, %v242_v59  ;;  %v259_v9 = vmul.f32 0.3275911, %v1227_v3  ;;  %978 = vtanh.f32 %v87_v28  ;;  %v674_v17 = vsub.f32 0.0, %v242_v59  ;;  %v193_v28 = vpop.f32.mrf.mxu1 }
  0xa5   :  { %2045 = vst [vmem:[#allocation16_spill] sm:$0xff] %v1207_v55  ;;  %v256_v2 = vmul.f32 0.3275911, %v240_v60  ;;  %v257_v5 = vmul.f32 0.3275911, %v1222_v63  ;;  %v672_v11 = vsub.f32 0.0, %v240_v60  ;;  %v1254_v27 = vadd.f32 %v973_v10, %v164_v14 }
  0xa6   :  { %2046 = vst [vmem:[#allocation17_spill] sm:$0xff] %v1210_v56  ;;  %v1231_v12 = vadd.f32 1.0, %v258_v0  ;;  %v1246_v22 = vmul.f32 0.70710677, %v1233_v13  ;;  %v1252_v26 = vadd.f32 1.0, %v259_v9  ;;  %v479_v33 = vand.u32 2147483648, %v1212_v57 }
  0xa7   :  { %2047 = vst [vmem:[#allocation18_spill] sm:$0xff] %v1219_v62  ;;  %v1237_v16 = vadd.f32 1.0, %v256_v2  ;;  %v1241_v19 = vadd.f32 1.0, %v257_v5  ;;  %v688_v29 = vmul.f32 %v672_v11, %v240_v60  ;;  %v690_v34 = vmul.f32 %v674_v17, %v242_v59 }
  0xa8   :  { %2048 = vst [vmem:[#allocation19_spill] sm:$0xff] %v1222_v63  ;;  %v1235_v15 = vpop.eup %974  ;;  %980 = vrcp.f32 %v1231_v12  ;;  %v254_v32 = vand.u32 2147483647, %v1246_v22  ;;  %v1263_v35 = vmul.f32 0.70710677, %v1239_v18  ;;  %v494_v52 = vand.u32 2147483648, %v1216_v61 }
  0xa9   :  { %2049 = vst [vmem:[#allocation20_spill] sm:$0xff] %v1227_v3  ;;  %v1248_v23 = vpop.eup %976  ;;  %v469_v31 = vmul.f32 %v1235_v15, %v1212_v57  ;;  %982 = vrcp.f32 %v1237_v16  ;;  %v728_v37 = vmul.f32 1.442695, %v700_v21  ;;  %v730_v43 = vmul.f32 1.442695, %v701_v25  ;;  %v166_v7 = vpop.f32.mrf.mxu0 }
  0xaa   :  { %2050 = vst [vmem:[#allocation21_spill] sm:$0xff] %v1231_v12  ;;  %984 = vrcp.f32 %v1241_v19  ;;  %v484_v38 = vmul.f32 %v1248_v23, %v1216_v61  ;;  %v270_v39 = vmul.f32 0.3275911, %v254_v32  ;;  %v1268_v42 = vpop.eup %978  ;;  %v1272_v44 = vand.u32 2147483647, %v1263_v35 }
  0xab   :  { %2051 = vst [vmem:[#allocation22_spill] sm:$0xff] %v1237_v16  ;;  %986 = vrcp.f32 %v1252_v26  ;;  %v1275_v45 = vmul.f32 0.70710677, %v1254_v27  ;;  %v704_v48 = vmul.f32 1.442695, %v688_v29  ;;  %v470_v50 = vsub.f32 1.0, %v469_v31 }
  0xac   :  { %2052 = vst [vmem:[#allocation23_spill] sm:$0xff] %v1241_v19  ;;  %988 = vtanh.f32 %v85_v36  ;;  %v708_v54 = vmul.f32 1.442695, %v690_v34  ;;  %v271_v58 = vmul.f32 0.3275911, %v1272_v44  ;;  %v485_v0 = vsub.f32 1.0, %v484_v38 }
  0xad   :  { %2053 = vst [vmem:[#allocation24_spill] sm:$0xff] %v1252_v26  ;;  %990 = vtanh.f32 %v1187_v30  ;;  %v1281_v59 = vand.u32 2147483647, %v1275_v45  ;;  %v1285_v1 = vadd.f32 1.0, %v270_v39  ;;  %v686_v2 = vsub.f32 0.0, %v254_v32 }
  0xae   :  { %2054 = vst [vmem:[#allocation25_spill] sm:$0xff] %v1275_v45  ;;  %v1283_v60 = vpop.eup %980  ;;  %992 = vpow2.f32 %v728_v37  ;;  %v329_v5 = vand.u32 2147483648, %v1231_v12  ;;  %v1290_v6 = vadd.f32 1.0, %v271_v58  ;;  %v1292_v30 = vadd.f32 %v973_v10, %v193_v28  ;;  %v195_v28 = vpop.f32.mrf.mxu1 }
  0xaf   :  { %2055 = vst [vmem:[#allocation26_spill] sm:$0xff] %v1283_v60  ;;  %v1287_v4 = vpop.eup %982  ;;  %994 = vpow2.f32 %v730_v43  ;;  %v1297_v11 = vor.u32 1.1754944e-38, %v479_v33  ;;  %v260_v14 = vmul.f32 0.3275911, %v1281_v59  ;;  %v1303_v21 = vmul.f32 %v1235_v15, %v470_v50 }
  0xb0   :  { %2056 = vst [vmem:[#allocation27_spill] sm:$0xff] %v1287_v4  ;;  %v1294_v8 = vpop.eup %984  ;;  %996 = vpow2.f32 %v704_v48  ;;  %v1305_v25 = vor.u32 1.1754944e-38, %v494_v52  ;;  %v319_v10 = vmul.f32 %v1283_v60, %v1231_v12  ;;  %v1310_v31 = vmul.f32 %v1248_v23, %v485_v0 }
  0xb1   :  { %2057 = vst [vmem:[#allocation28_spill] sm:$0xff] %v1294_v8  ;;  %v1300_v17 = vpop.eup %986  ;;  %998 = vpow2.f32 %v708_v54  ;;  %v702_v33 = vmul.f32 %v686_v2, %v254_v32  ;;  %v1313_v34 = vadd.f32 1.0, %v260_v14  ;;  %v1319_v37 = vmul.f32 %v1287_v4, %v1237_v16 }
  0xb2   :  { %2058 = vst [vmem:[#allocation29_spill] sm:$0xff] %v1300_v17  ;;  %v989_v29 = vpop.eup %988  ;;  %1000 = vrcp.f32 %v1285_v1  ;;  %v1321_v38 = vor.u32 1.1754944e-38, %v329_v5  ;;  %v1325_v39 = vmul.f32 0.70710677, %v1292_v30  ;;  %v1331_v32 = vmul.f32 %v1294_v8, %v1241_v19 }
  0xb3   :  { %v1315_v36 = vpop.eup %990  ;;  %2059 = vst [vmem:[#allocation30_spill] sm:$0xff] %v1319_v37  ;;  %1002 = vrcp.f32 %v1290_v6  ;;  %v344_v48 = vand.u32 2147483648, %v1252_v26  ;;  %v687_v50 = vsub.f32 0.0, %v1272_v44  ;;  %v1335_v52 = vadd.f32 %v989_v29, %v166_v7 }
  0xb4   :  { %2060 = vst [vmem:[#allocation31_spill] sm:$0xff] %v1321_v38  ;;  %v1327_v43 = vpop.eup %992  ;;  %v320_v58 = vsub.f32 1.0, %v319_v10  ;;  %v334_v0 = vmul.f32 %v1300_v17, %v1252_v26  ;;  %v1342_v2 = vmul.f32 0.5, %v1233_v13  ;;  %v509_v5 = vand.u32 2147483648, %v1285_v1 }
  0xb5   :  { %2061 = vst [vmem:[#allocation32_spill] sm:$0xff] %v1325_v39  ;;  %v1337_v54 = vpop.eup %994  ;;  %v732_v9 = vmul.f32 1.442695, %v702_v33  ;;  %1004 = vrcp.f32 %v1313_v34  ;;  %v676_v55 = vsub.f32 0.0, %v1281_v59  ;;  %v245_v7 = vand.u32 2147483647, %v1325_v39 }
  0xb6   :  { %2062 = vst [vmem:[#allocation33_spill] sm:$0xff] %v1331_v32  ;;  %v1345_v14 = vpop.eup %996  ;;  %v1354_v62 = vmul.f32 0.5, %v1239_v18  ;;  %v1357_v13 = vmul.f32 0.70710677, %v1335_v52  ;;  %v1359_v56 = vadd.f32 %v989_v29, %v195_v28  ;;  %v1364_v47 = vor.u32 1.1754944e-38, %v344_v48  ;;  %v169_v29 = vpop.f32.mrf.mxu0 }
  0xb7   :  { %2063 = vst [vmem:[#allocation34_spill] sm:$0xff] %v1345_v14  ;;  %v1350_v49 = vpop.eup %998  ;;  %v703_v51 = vmul.f32 %v687_v50, %v1272_v44  ;;  %v261_v53 = vmul.f32 0.3275911, %v245_v7  ;;  %v1370_v10 = vmul.f32 %v1283_v60, %v320_v58  ;;  %v335_v18 = vsub.f32 1.0, %v334_v0  ;;  %v198_v0 = vpop.f32.mrf.mxu1 }
  0xb8   :  { %2064 = vst [vmem:[#allocation35_spill] sm:$0xff] %v1350_v49  ;;  %v1361_v46 = vpop.eup %1000  ;;  %v1373_v14 = vmul.f32 0.5, %v1254_v27  ;;  %v246_v28 = vand.u32 2147483647, %v1357_v13  ;;  %v1376_v63 = vor.u32 1.1754944e-38, %v509_v5  ;;  %1006 = vpow2.f32 %v732_v9 }
  0xb9   :  { %2065 = vst [vmem:[#allocation36_spill] sm:$0xff] %v1357_v13  ;;  %v1367_v49 = vpop.eup %1002  ;;  %v692_v48 = vmul.f32 %v676_v55, %v1281_v59  ;;  %v1379_v33 = vadd.f32 1.0, %v261_v53  ;;  %v524_v44 = vand.u32 2147483648, %v1290_v6  ;;  %v677_v50 = vsub.f32 0.0, %v245_v7 }
  0xba   :  { %2066 = vst [vmem:[#allocation37_spill] sm:$0xff] %v1359_v56  ;;  %v1383_v58 = vmul.f32 0.70710677, %v1359_v56  ;;  %v499_v3 = vmul.f32 %v1361_v46, %v1285_v1  ;;  %v514_v9 = vmul.f32 %v1367_v49, %v1290_v6  ;;  %v734_v5 = vmul.f32 1.442695, %v703_v51 }
  0xbb   :  { %2067 = vst [vmem:[#allocation38_spill] sm:$0xff] %v1364_v47  ;;  %v262_v47 = vmul.f32 0.3275911, %v246_v28  ;;  %v1385_v27 = vpop.eup %1004  ;;  %1008 = vrcp.f32 %v1379_v33  ;;  %v359_v53 = vand.u32 2147483648, %v1313_v34  ;;  %v678_v59 = vsub.f32 0.0, %v246_v28 }
  0xbc   :  { %2068 = vst [vmem:[#allocation39_spill] sm:$0xff] %v1370_v10  ;;  %v1397_v19 = vmul.f32 %v1300_v17, %v335_v18  ;;  %v712_v39 = vmul.f32 1.442695, %v692_v48  ;;  %v247_v8 = vand.u32 2147483647, %v1383_v58  ;;  %v1401_v32 = vadd.f32 %v1268_v42, %v198_v0 }
  0xbd   :  { %2069 = vst [vmem:[#allocation40_spill] sm:$0xff] %v1373_v14  ;;  %v1393_v55 = vadd.f32 1.0, %v262_v47  ;;  %v170_v14 = vadd.f32 %v1268_v42, %v169_v29  ;;  %v1403_v26 = vor.u32 1.1754944e-38, %v524_v44  ;;  %v349_v51 = vmul.f32 %v1385_v27, %v1313_v34 }
  0xbe   :  { %2070 = vst [vmem:[#allocation41_spill] sm:$0xff] %v1383_v58  ;;  %v1408_v47 = vmul.f32 0.5, %v1292_v30  ;;  %v693_v56 = vmul.f32 %v677_v50, %v245_v7  ;;  %v1410_v38 = vpop.eup %1006  ;;  %v500_v29 = vsub.f32 1.0, %v499_v3  ;;  %v515_v18 = vsub.f32 1.0, %v514_v9 }
  0xbf   :  { %2071 = vst [vmem:[#allocation42_spill] sm:$0xff] %v1397_v19  ;;  %1010 = vrcp.f32 %v1393_v55  ;;  %v263_v48 = vmul.f32 0.3275911, %v247_v8  ;;  %v1413_v19 = vor.u32 1.1754944e-38, %v359_v53  ;;  %v694_v42 = vmul.f32 %v678_v59, %v246_v28  ;;  %v171_v53 = vpop.f32.mrf.mxu0 }
  0xc0   :  { %2072 = vst [vmem:[#allocation43_spill] sm:$0xff] %v1408_v47  ;;  %1012 = vpow2.f32 %v734_v5  ;;  %v1415_v44 = vmul.f32 0.70710677, %v170_v14  ;;  %v679_v30 = vsub.f32 0.0, %v247_v8  ;;  %v1422_v7 = vmul.f32 0.70710677, %v1401_v32 }
  0xc1   :  { %v1417_v0 = vpop.eup %1008  ;;  %1014 = vpow2.f32 %v712_v39  ;;  %v1419_v58 = vadd.f32 1.0, %v263_v48  ;;  %v350_v3 = vsub.f32 1.0, %v349_v51  ;;  %v374_v50 = vand.u32 2147483648, %v1379_v33 }
  0xc2   :  { %2073 = vst [vmem:[#allocation44_spill] sm:$0xff] %v1422_v7  ;;  %v714_v9 = vmul.f32 1.442695, %v693_v56  ;;  %v248_v5 = vand.u32 2147483647, %v1415_v44  ;;  %v1427_v28 = vmul.f32 %v1361_v46, %v500_v29  ;;  %v1430_v59 = vmul.f32 %v1367_v49, %v515_v18 }
  0xc3   :  { %v1433_v39 = vmul.f32 0.5, %v1335_v52  ;;  %1016 = vrcp.f32 %v1419_v58  ;;  %v364_v51 = vmul.f32 %v1417_v0, %v1379_v33  ;;  %v716_v48 = vmul.f32 1.442695, %v694_v42 }
  0xc4   :  { %v264_v47 = vmul.f32 0.3275911, %v248_v5  ;;  %v680_v56 = vsub.f32 0.0, %v248_v5  ;;  %vm473_vm2 = vweird.f32 %v1212_v57  ;;  %vm474_vm3 = vweird.f32 %v1235_v15 }
  0xc5   :  { %2074 = vst [vmem:[#allocation45_spill] sm:$0xff] %v1433_v39  ;;  %v1438_v17 = vpop.eup %1010  ;;  %v389_v29 = vand.u32 2147483648, %v1393_v55  ;;  %v695_v18 = vmul.f32 %v679_v30, %v247_v8  ;;  %v249_v52 = vand.u32 2147483647, %v1422_v7  ;;  %v172_v39 = vadd.f32 %v1315_v36, %v171_v53  ;;  %v200_v53 = vpop.f32.mrf.mxu1  ;;  %vm1515_vm10 = vmor %vm473_vm2, %vm474_vm3 }
  0xc6   :  { %v1445_v13 = vpop.eup %1012  ;;  %v1448_v10 = vmul.f32 %v1385_v27, %v350_v3  ;;  %v1450_v42 = vor.u32 1.1754944e-38, %v374_v50  ;;  %1018 = vpow2.f32 %v714_v9  ;;  %v379_v45 = vmul.f32 %v1438_v17, %v1393_v55 }
  0xc7   :  { %v1454_v16 = vpop.eup %1014  ;;  %v404_v4 = vand.u32 2147483648, %v1419_v58  ;;  %v1457_v8 = vadd.f32 1.0, %v264_v47  ;;  %v265_v30 = vmul.f32 0.3275911, %v249_v52  ;;  %v681_v37 = vsub.f32 0.0, %v249_v52 }
  0xc8   :  { %2075 = vst [vmem:[#allocation46_spill] sm:$0xff] %v1450_v42  ;;  %v365_v12 = vsub.f32 1.0, %v364_v51  ;;  %1020 = vpow2.f32 %v716_v48  ;;  %v696_v60 = vmul.f32 %v680_v56, %v248_v5  ;;  %v1459_v3 = vmul.f32 0.70710677, %v172_v39 }
  0xc9   :  { %2076 = vst [vmem:[#allocation47_spill] sm:$0xff] %v1454_v16  ;;  %v1461_v50 = vpop.eup %1016  ;;  %vm503_vm4 = vweird.f32 %v1285_v1  ;;  %vm504_vm5 = vweird.f32 %v1361_v46  ;;  %v1465_v9 = vor.u32 1.1754944e-38, %v389_v29  ;;  %v718_v16 = vmul.f32 1.442695, %v695_v18 }
  0xca   :  { %v1467_v42 = vmul.f32 0.5, %v170_v14  ;;  %1022 = vrcp.f32 %v1457_v8  ;;  %v380_v47 = vsub.f32 1.0, %v379_v45  ;;  %v394_v51 = vmul.f32 %v1461_v50, %v1419_v58  ;;  %vm1545_vm12 = vmor %vm503_vm4, %vm504_vm5 }
  0xcb   :  { %2077 = vst [vmem:[#allocation48_spill] sm:$0xff] %v1465_v9  ;;  %v1472_v5 = vadd.f32 1.0, %v265_v30  ;;  %v1475_v48 = vadd.f32 %v1315_v36, %v200_v53  ;;  %vm488_vm6 = vweird.f32 %v1216_v61  ;;  %vm489_vm7 = vweird.f32 %v1248_v23 }
  0xcc   :  { %2078 = vst [vmem:[#allocation49_spill] sm:$0xff] %v1467_v42  ;;  %v1479_v56 = vor.u32 1.1754944e-38, %v404_v4  ;;  %v1482_v14 = vmul.f32 0.5, %v1401_v32  ;;  %v697_v29 = vmul.f32 %v681_v37, %v249_v52  ;;  %v250_v45 = vand.u32 2147483647, %v1459_v3  ;;  %v1485_v18 = vpop.eup %1018  ;;  %vm1564_vm14 = vmor %vm488_vm6, %vm489_vm7 }
  0xcd   :  { %2079 = vst [vmem:[#allocation50_spill] sm:$0xff] %v1475_v48  ;;  %v1488_v30 = vmul.f32 %v1417_v0, %v365_v12  ;;  %v419_v36 = vand.u32 2147483648, %v1457_v8  ;;  %v720_v53 = vmul.f32 1.442695, %v696_v60  ;;  %1024 = vrcp.f32 %v1472_v5 }
  0xce   :  { %2080 = vst [vmem:[#allocation51_spill] sm:$0xff] %v1479_v56  ;;  %v395_v9 = vsub.f32 1.0, %v394_v51  ;;  %v434_v4 = vand.u32 2147483648, %v1472_v5  ;;  %v266_v56 = vmul.f32 0.3275911, %v250_v45  ;;  %v682_v42 = vsub.f32 0.0, %v250_v45  ;;  %v1493_v32 = vpop.eup %1020 }
  0xcf   :  { %2081 = vst [vmem:[#allocation52_spill] sm:$0xff] %v1482_v14  ;;  %v1496_v37 = vmul.f32 %v1438_v17, %v380_v47  ;;  %1026 = vpow2.f32 %v718_v16  ;;  %v1498_v52 = vmul.f32 0.5, %v172_v39  ;;  %v1501_v12 = vmul.f32 0.70710677, %v1475_v48 }
  0xd0   :  { %2082 = vst [vmem:[#allocation53_spill] sm:$0xff] %v1485_v18  ;;  %v1503_v18 = vpop.eup %1022  ;;  %vm518_vm8 = vweird.f32 %v1290_v6  ;;  %vm519_vm9 = vweird.f32 %v1367_v49  ;;  %v722_v60 = vmul.f32 1.442695, %v697_v29  ;;  %v1507_v51 = vadd.f32 1.0, %v266_v56 }
  0xd1   :  { %2083 = vst [vmem:[#allocation54_spill] sm:$0xff] %v1488_v30  ;;  %v698_v14 = vmul.f32 %v682_v42, %v250_v45  ;;  %v472_v47 = vadd.f32 %v1235_v15, %v1303_v21  ;;  %v409_v39 = vmul.f32 %v1503_v18, %v1457_v8  ;;  %1028 = vpow2.f32 %v720_v53  ;;  %vm1604_vm4 = vmor %vm518_vm8, %vm519_vm9 }
  0xd2   :  { %2084 = vst [vmem:[#allocation55_spill] sm:$0xff] %v1493_v32  ;;  %v1521_v32 = vor.u32 1.1754944e-38, %v419_v36  ;;  %v251_v56 = vand.u32 2147483647, %v1501_v12  ;;  %v1525_v42 = vmul.f32 %v1461_v50, %v395_v9  ;;  %v1527_v21 = vor.u32 1.1754944e-38, %v434_v4 }
  0xd3   :  { %2085 = vst [vmem:[#allocation56_spill] sm:$0xff] %v1498_v52  ;;  %1030 = vrcp.f32 %v1507_v51  ;;  %v724_v29 = vmul.f32 1.442695, %v698_v14  ;;  %v1530_v45 = vpop.eup %1024  ;;  %v410_v48 = vsub.f32 1.0, %v409_v39  ;;  %v449_v52 = vand.u32 2147483648, %v1507_v51 }
  0xd4   :  { %2086 = vst [vmem:[#allocation57_spill] sm:$0xff] %v1501_v12  ;;  %v267_v30 = vmul.f32 0.3275911, %v251_v56  ;;  %v683_v7 = vsub.f32 0.0, %v251_v56  ;;  %vm414_vm11 = vweird.f32 %v1503_v18  ;;  %v424_v36 = vmul.f32 %v1530_v45, %v1472_v5 }
  0xd5   :  { %1032 = vpow2.f32 %v722_v60  ;;  %v476_v9 = vsel %vm1515_vm10, %v1235_v15, %v472_v47  ;;  %v1539_v53 = vpop.eup %1026  ;;  %v477_v60 = vand.u32 2147483647, %v1212_v57  ;;  %vm413_vm13 = vweird.f32 %v1457_v8 }
  0xd6   :  { %2089 = vst [vmem:[#allocation58_spill] sm:$0xff] %v1539_v53  ;;  %1034 = vpow2.f32 %v724_v29  ;;  %v1549_v4 = vadd.f32 1.0, %v267_v30  ;;  %v699_v39 = vmul.f32 %v683_v7, %v251_v56  ;;  %v425_v16 = vsub.f32 1.0, %v424_v36  ;;  %vm415_vm8 = vmor %vm413_vm13, %vm414_vm11 }
  0xd7   :  { %v502_v15 = vadd.f32 %v1361_v46, %v1427_v28  ;;  %v507_v47 = vand.u32 2147483647, %v1285_v1  ;;  %v487_v53 = vadd.f32 %v1248_v23, %v1310_v31  ;;  %v1558_v12 = vpop.eup %1028  ;;  %v411_v57 = vmul.f32 %v1503_v18, %v410_v48 }
  0xd8   :  { %v1569_v30 = vor.u32 1.1754944e-38, %v449_v52  ;;  %1036 = vrcp.f32 %v1549_v4  ;;  %v464_v1 = vand.u32 2147483648, %v1549_v4  ;;  %v726_v31 = vmul.f32 1.442695, %v699_v39 }
  0xd9   :  { %v1573_v28 = vpop.eup %1030  ;;  %vm478_vm15 = vcmp.eq.f32.partialorder %v477_v60, 8.507059e+37  ;;  %v506_v56 = vsel %vm1545_vm12, %v1361_v46, %v502_v15  ;;  %vm508_vm0 = vcmp.eq.f32.partialorder %v507_v47, 8.507059e+37  ;;  %v426_v29 = vmul.f32 %v1530_v45, %v425_v16 }
  0xda   :  { %v439_v48 = vmul.f32 %v1573_v28, %v1507_v51  ;;  %vm444_vm1 = vweird.f32 %v1573_v28  ;;  %v1582_v52 = vor.u32 1.1754944e-38, %v464_v1  ;;  %vm429_vm2 = vweird.f32 %v1530_v45 }
  0xdb   :  { %v1584_v36 = vpop.eup %1032  ;;  %vm443_vm3 = vweird.f32 %v1507_v51  ;;  %v1589_v39 = vsel %vm478_vm15, %v1297_v11, %v476_v9  ;;  %v1592_v46 = vsel %vm508_vm0, %v1376_v63, %v506_v56  ;;  %v491_v14 = vsel %vm1564_vm14, %v1248_v23, %v487_v53 }
  0xdc   :  { %2094 = vst [vmem:[#allocation59_spill] sm:$0xff] %v1584_v36  ;;  %v492_v60 = vand.u32 2147483647, %v1216_v61  ;;  %v1598_v16 = vpop.eup %1034  ;;  %v440_v11 = vsub.f32 1.0, %v439_v48  ;;  %v540_v63 = vmul.f32 1.0614054, %v1589_v39  ;;  %v517_v23 = vadd.f32 %v1367_v49, %v1430_v59  ;;  %vm445_vm12 = vmor %vm443_vm3, %vm444_vm1 }
  0xdd   :  { %v542_v9 = vmul.f32 1.0614054, %v1592_v46  ;;  %vm428_vm5 = vweird.f32 %v1472_v5  ;;  %v522_v61 = vand.u32 2147483647, %v1290_v6  ;;  %v412_v53 = vadd.f32 %v1503_v18, %v411_v57 }
  0xde   :  { %vm493_vm6 = vcmp.eq.f32.partialorder %v492_v60, 8.507059e+37  ;;  %v417_v47 = vand.u32 2147483647, %v1457_v8  ;;  %v1616_v7 = vpop.eup %1036  ;;  %1038 = vpow2.f32 %v726_v31  ;;  %v556_v1 = vadd.f32 -1.4531521, %v540_v63  ;;  %vm1664_vm14 = vmor %vm428_vm5, %vm429_vm2 }
  0xdf   :  { %v558_v56 = vadd.f32 -1.4531521, %v542_v9  ;;  %v1619_v48 = vsel %vm493_vm6, %v1305_v25, %v491_v14  ;;  %v441_v36 = vmul.f32 %v1573_v28, %v440_v11  ;;  %v454_v59 = vmul.f32 %v1616_v7, %v1549_v4 }
  0xe0   :  { %v521_v6 = vsel %vm1604_vm4, %v1367_v49, %v517_v23  ;;  %vm523_vm7 = vcmp.eq.f32.partialorder %v522_v61, 8.507059e+37  ;;  %v572_v57 = vmul.f32 %v556_v1, %v1589_v39  ;;  %v541_v14 = vmul.f32 1.0614054, %v1619_v48 }
  0xe1   :  { %v574_v25 = vmul.f32 %v558_v56, %v1592_v46  ;;  %v1634_v31 = vsel %vm523_vm7, %v1403_v26, %v521_v6  ;;  %v455_v60 = vsub.f32 1.0, %v454_v59  ;;  %vm459_vm9 = vweird.f32 %v1616_v7 }
  0xe2   :  { %v543_v49 = vmul.f32 1.0614054, %v1634_v31  ;;  %v416_v15 = vsel %vm415_vm8, %v1503_v18, %v412_v53  ;;  %vm418_vm10 = vcmp.eq.f32.partialorder %v417_v47, 8.507059e+37  ;;  %v588_v11 = vadd.f32 1.4214138, %v572_v57 }
  0xe3   :  { %v590_v8 = vadd.f32 1.4214138, %v574_v25  ;;  %v557_v63 = vadd.f32 -1.4531521, %v541_v14  ;;  %v1641_v9 = vsel %vm418_vm10, %v1521_v32, %v416_v15  ;;  %v456_v23 = vmul.f32 %v1616_v7, %v455_v60 }
  0xe4   :  { %vm458_vm11 = vweird.f32 %v1549_v4  ;;  %v559_v26 = vadd.f32 -1.4531521, %v543_v49  ;;  %v442_v61 = vadd.f32 %v1573_v28, %v441_v36  ;;  %v447_v1 = vand.u32 2147483647, %v1507_v51  ;;  %v1647_v56 = vpop.eup %1038 }
  0xe5   :  { %v604_v18 = vmul.f32 %v588_v11, %v1589_v39  ;;  %v606_v32 = vmul.f32 %v590_v8, %v1592_v46  ;;  %v573_v53 = vmul.f32 %v557_v63, %v1619_v48  ;;  %v536_v47 = vmul.f32 1.0614054, %v1641_v9  ;;  %vm1693_vm2 = vmor %vm458_vm11, %vm459_vm9 }
  0xe6   :  { %v575_v59 = vmul.f32 %v559_v26, %v1634_v31  ;;  %v446_v36 = vsel %vm445_vm12, %v1573_v28, %v442_v61  ;;  %vm448_vm13 = vcmp.eq.f32.partialorder %v447_v1, 8.507059e+37  ;;  %v427_v6 = vadd.f32 %v1530_v45, %v426_v29 }
  0xe7   :  { %v620_v57 = vadd.f32 -0.28449672, %v604_v18  ;;  %v622_v25 = vadd.f32 -0.28449672, %v606_v32  ;;  %v589_v14 = vadd.f32 1.4214138, %v573_v53  ;;  %v1669_v60 = vsel %vm448_vm13, %v1569_v30, %v446_v36 }
  0xe8   :  { %v591_v49 = vadd.f32 1.4214138, %v575_v59  ;;  %v538_v28 = vmul.f32 1.0614054, %v1669_v60  ;;  %v552_v15 = vadd.f32 -1.4531521, %v536_v47  ;;  %v431_v29 = vsel %vm1664_vm14, %v1530_v45, %v427_v6 }
  0xe9   :  { %v636_v11 = vmul.f32 %v620_v57, %v1589_v39  ;;  %v638_v8 = vmul.f32 %v622_v25, %v1592_v46  ;;  %v605_v63 = vmul.f32 %v589_v14, %v1619_v48  ;;  %v432_v26 = vand.u32 2147483647, %v1472_v5 }
  0xea   :  { %v607_v61 = vmul.f32 %v591_v49, %v1634_v31  ;;  %v554_v30 = vadd.f32 -1.4531521, %v538_v28  ;;  %v568_v1 = vmul.f32 %v552_v15, %v1641_v9  ;;  %v457_v18 = vadd.f32 %v1616_v7, %v456_v23 }
  0xeb   :  { %v652_v32 = vadd.f32 0.2548296, %v636_v11  ;;  %v654_v53 = vadd.f32 0.2548296, %v638_v8  ;;  %v621_v47 = vadd.f32 -0.28449672, %v605_v63  ;;  %v1684_v45 = vadd.f32 %v1385_v27, %v1448_v10 }
  0xec   :  { %vm780_vm15 = vcmp.ge.f32.partialorder %v1189_v40, 0.0  ;;  %vm782_vm0 = vcmp.ge.f32.partialorder %v1246_v22, 0.0  ;;  %v623_v59 = vadd.f32 -0.28449672, %v607_v61  ;;  %v570_v5 = vmul.f32 %v554_v30, %v1669_v60 }
  0xed   :  { %v584_v36 = vadd.f32 1.4214138, %v568_v1  ;;  %vm433_vm1 = vcmp.eq.f32.partialorder %v432_v26, 8.507059e+37  ;;  %v668_v10 = vmul.f32 %v652_v32, %v1589_v39  ;;  %v670_v6 = vmul.f32 %v654_v53, %v1592_v46 }
  0xee   :  { %v637_v51 = vmul.f32 %v621_v47, %v1619_v48  ;;  %v1701_v57 = vsel %vm433_vm1, %v1527_v21, %v431_v29  ;;  %v639_v25 = vmul.f32 %v623_v59, %v1634_v31  ;;  %v586_v14 = vadd.f32 1.4214138, %v570_v5 }
  0xef   :  { %v600_v49 = vmul.f32 %v584_v36, %v1641_v9  ;;  %v461_v28 = vsel %vm1693_vm2, %v1616_v7, %v457_v18  ;;  %v748_v15 = vmul.f32 %v1327_v43, %v668_v10  ;;  %v750_v39 = vmul.f32 %v1410_v38, %v670_v6 }
  0xf0   :  { %v653_v11 = vadd.f32 0.2548296, %v637_v51  ;;  %v462_v46 = vand.u32 2147483647, %v1549_v4  ;;  %vm781_vm3 = vcmp.ge.f32.partialorder %v1191_v41, 0.0  ;;  %vm354_vm4 = vweird.f32 %v1385_v27 }
  0xf1   :  { %v655_v21 = vadd.f32 0.2548296, %v639_v25  ;;  %v602_v29 = vmul.f32 %v586_v14, %v1669_v60  ;;  %v616_v8 = vadd.f32 -0.28449672, %v600_v49  ;;  %v537_v63 = vmul.f32 1.0614054, %v1701_v57 }
  0xf2   :  { %vm783_vm5 = vcmp.ge.f32.partialorder %v1263_v35, 0.0  ;;  %v764_v7 = vsub.f32 1.0, %v748_v15  ;;  %v766_v26 = vsub.f32 1.0, %v750_v39  ;;  %v669_v43 = vmul.f32 %v653_v11, %v1619_v48 }
  0xf3   :  { %vm463_vm6 = vcmp.eq.f32.partialorder %v462_v46, 8.507059e+37  ;;  %vm353_vm7 = vweird.f32 %v1313_v34  ;;  %v671_v38 = vmul.f32 %v655_v21, %v1634_v31  ;;  %v618_v4 = vadd.f32 -0.28449672, %v602_v29 }
  0xf4   :  { %v632_v61 = vmul.f32 %v616_v8, %v1641_v9  ;;  %v1721_v30 = vsel %vm463_vm6, %v1582_v52, %v461_v28  ;;  %v796_v1 = vsub.f32 0.0, %v764_v7  ;;  %v798_v18 = vsub.f32 0.0, %v766_v26 }
  0xf5   :  { %v749_v32 = vmul.f32 %v1337_v54, %v669_v43  ;;  %v539_v53 = vmul.f32 1.0614054, %v1721_v30  ;;  %vm384_vm8 = vweird.f32 %v1438_v17  ;;  %v751_v48 = vmul.f32 %v1445_v13, %v671_v38 }
  0xf6   :  { %v634_v47 = vmul.f32 %v618_v4, %v1669_v60  ;;  %v648_v59 = vadd.f32 0.2548296, %v632_v61  ;;  %v553_v31 = vadd.f32 -1.4531521, %v537_v63  ;;  %v812_v5 = vsel %vm780_vm15, %v764_v7, %v796_v1  ;;  %vm1754_vm15 = vmor %vm353_vm7, %vm354_vm4 }
  0xf7   :  { %v814_v52 = vsel %vm782_vm0, %v766_v26, %v798_v18  ;;  %v765_v36 = vsub.f32 1.0, %v749_v32  ;;  %v555_v23 = vadd.f32 -1.4531521, %v539_v53  ;;  %vm383_vm9 = vweird.f32 %v1393_v55 }
  0xf8   :  { %vm776_vm10 = vcmp.ge.f32.partialorder %v1415_v44, 0.0  ;;  %v828_v54 = vadd.f32 1.0, %v812_v5  ;;  %v830_v10 = vadd.f32 1.0, %v814_v52  ;;  %v767_v6 = vsub.f32 1.0, %v751_v48  ;;  %vm1775_vm2 = vmor %vm383_vm9, %vm384_vm8  ;;  %v2106_v5 = vld [vmem:[#allocation49_spill] sm:$0xff] }
  0xf9   :  { %v650_v13 = vadd.f32 0.2548296, %v634_v47  ;;  %vm778_vm11 = vcmp.ge.f32.partialorder %v1459_v3, 0.0  ;;  %v797_v51 = vsub.f32 0.0, %v765_v36  ;;  %v664_v25 = vmul.f32 %v648_v59, %v1641_v9 }
  0xfa   :  { %v569_v40 = vmul.f32 %v553_v31, %v1701_v57  ;;  %v571_v22 = vmul.f32 %v555_v23, %v1721_v30  ;;  %vm369_vm12 = vweird.f32 %v1417_v0  ;;  %v844_v14 = vmul.f32 %v828_v54, %v1243_v20  ;;  %v2105_v31 = vld [vmem:[#allocation44_spill] sm:$0xff] }
  0xfb   :  { %v846_v49 = vmul.f32 %v830_v10, %v1342_v2  ;;  %v799_v28 = vsub.f32 0.0, %v767_v6  ;;  %v666_v15 = vmul.f32 %v650_v13, %v1669_v60  ;;  %v813_v39 = vsel %vm781_vm3, %v765_v36, %v797_v51  ;;  %v2107_v36 = vld [vmem:[#allocation48_spill] sm:$0xff] }
  0xfc   :  { %v744_v11 = vmul.f32 %v1558_v12, %v664_v25  ;;  %v585_v46 = vadd.f32 1.4214138, %v569_v40  ;;  %v587_v9 = vadd.f32 1.4214138, %v571_v22  ;;  %vm368_vm13 = vweird.f32 %v1379_v33  ;;  %v2111_v10 = vld [vmem:[#allocation56_spill] sm:$0xff] }
  0xfd   :  { %vm399_vm14 = vweird.f32 %v1461_v50  ;;  %v855_v21 = vpack.c.bf16 %v846_v49, %v844_v14  ;;  %v815_v20 = vsel %vm783_vm5, %v767_v6, %v799_v28  ;;  %v829_v29 = vadd.f32 1.0, %v813_v39  ;;  %vm1803_vm5 = vmor %vm368_vm13, %vm369_vm12  ;;  %v2114_v28 = vld [vmem:[#allocation59_spill] sm:$0xff] }
  0xfe   :  { %v746_v2 = vmul.f32 %v1598_v16, %v666_v15  ;;  %v831_v12 = vadd.f32 1.0, %v815_v20  ;;  %v760_v60 = vsub.f32 1.0, %v744_v11  ;;  %v601_v8 = vmul.f32 %v585_v46, %v1701_v57  ;;  %v2115_v46 = vld [vmem:[#allocation26_spill] sm:$0xff] }
  0xff   :  { %v603_v63 = vmul.f32 %v587_v9, %v1721_v30  ;;  %vm398_vm0 = vweird.f32 %v1419_v58  ;;  %865 = vmatpush.bf16.msrb.mxu2 %v855_v21  ;;  %v845_v35 = vmul.f32 %v829_v29, %v1250_v24  ;;  %v356_v7 = vsel %vm1754_vm15, %v1385_v27, %v1684_v45  ;;  %v2116_v29 = vld [vmem:[#allocation46_spill] sm:$0xff] }
 0x100   :  { %v762_v16 = vsub.f32 1.0, %v746_v2  ;;  %v357_v26 = vand.u32 2147483647, %v1313_v34  ;;  %v847_v43 = vmul.f32 %v831_v12, %v1354_v62  ;;  %v792_v38 = vsub.f32 0.0, %v760_v60  ;;  %vm1821_vm6 = vmor %vm398_vm0, %vm399_vm14 }
 0x101   :  { %v617_v4 = vadd.f32 -0.28449672, %v601_v8  ;;  %v619_v61 = vadd.f32 -0.28449672, %v603_v63  ;;  %v382_v18 = vadd.f32 %v1438_v17, %v1496_v37  ;;  %v387_v24 = vand.u32 2147483647, %v1393_v55 }
 0x102   :  { %v794_v1 = vsub.f32 0.0, %v762_v16  ;;  %vm358_vm1 = vcmp.eq.f32.partialorder %v357_v26, 8.507059e+37  ;;  %v856_v34 = vpack.c.bf16 %v847_v43, %v845_v35  ;;  %v808_v62 = vsel %vm776_vm10, %v760_v60, %v792_v38  ;;  %v2118_v60 = vld [vmem:[#allocation21_spill] sm:$0xff]  ;;  %v2119_v63 = vld [vmem:[#allocation51_spill] sm:$0xff]  ;;  %v2120_v43 = vld [vmem:[#allocation30_spill] sm:$0xff] }
 0x103   :  { %v633_v45 = vmul.f32 %v617_v4, %v1701_v57  ;;  %v635_v32 = vmul.f32 %v619_v61, %v1721_v30  ;;  %v824_v53 = vadd.f32 1.0, %v808_v62  ;;  %v1786_v48 = vsel %vm358_vm1, %v1413_v19, %v356_v7  ;;  %v2108_v19 = vld [vmem:[#allocation54_spill] sm:$0xff]  ;;  %v2122_v4 = vld [vmem:[#allocation27_spill] sm:$0xff] }
 0x104   :  { %v810_v37 = vsel %vm778_vm11, %v762_v16, %v794_v1  ;;  %v386_v55 = vsel %vm1775_vm2, %v1438_v17, %v382_v18  ;;  %878 = vmatpush.bf16.msrb.mxu3 %v856_v34  ;;  %vm388_vm3 = vcmp.eq.f32.partialorder %v387_v24, 8.507059e+37  ;;  %vm777_vm4 = vcmp.ge.f32.partialorder %v2105_v31, 0.0  ;;  %v2123_v1 = vld [vmem:[#allocation50_spill] sm:$0xff] }
 0x105   :  { %v826_v47 = vadd.f32 1.0, %v810_v37  ;;  %v649_v59 = vadd.f32 0.2548296, %v633_v45  ;;  %v651_v44 = vadd.f32 0.2548296, %v635_v32  ;;  %v840_v52 = vmul.f32 %v824_v53, %v2106_v5 }
 0x106   :  { %v1794_v3 = vsel %vm388_vm3, %v2107_v36, %v386_v55  ;;  %v532_v23 = vmul.f32 1.0614054, %v1786_v48  ;;  %v367_v54 = vadd.f32 %v1417_v0, %v2108_v19  ;;  %v372_v14 = vand.u32 2147483647, %v1379_v33  ;;  %v2125_v19 = vld [vmem:[#allocation22_spill] sm:$0xff] }
 0x107   :  { %v842_v6 = vmul.f32 %v826_v47, %v2111_v10  ;;  %v665_v13 = vmul.f32 %v649_v59, %v1701_v57  ;;  %v667_v51 = vmul.f32 %v651_v44, %v1721_v30  ;;  %v534_v25 = vmul.f32 1.0614054, %v1794_v3  ;;  %v2124_v59 = vld [vmem:[#allocation52_spill] sm:$0xff] }
 0x108   :  { %v548_v40 = vadd.f32 -1.4531521, %v532_v23  ;;  %v371_v22 = vsel %vm1803_vm5, %v1417_v0, %v367_v54  ;;  %v397_v49 = vadd.f32 %v1461_v50, %v1525_v42  ;;  %vm373_vm7 = vcmp.eq.f32.partialorder %v372_v14, 8.507059e+37 }
 0x109   :  { %v853_v30 = vpack.c.bf16 %v842_v6, %v840_v52  ;;  %v745_v15 = vmul.f32 %v2114_v28, %v665_v13  ;;  %v747_v39 = vmul.f32 %v1647_v56, %v667_v51  ;;  %v550_v11 = vadd.f32 -1.4531521, %v534_v25  ;;  %v2117_v56 = vld [vmem:[#allocation57_spill] sm:$0xff]  ;;  %v2132_v28 = vld [vmem:[#allocation36_spill] sm:$0xff] }
 0x10a   :  { %v564_v0 = vmul.f32 %v548_v40, %v1786_v48  ;;  %v401_v33 = vsel %vm1821_vm6, %v1461_v50, %v397_v49  ;;  %v402_v42 = vand.u32 2147483647, %v1419_v58  ;;  %vm324_vm8 = vweird.f32 %v2115_v46  ;;  %v2128_v25 = vld [vmem:[#allocation25_spill] sm:$0xff]  ;;  %v2129_v49 = vld [vmem:[#allocation39_spill] sm:$0xff] }
 0x10b   :  { %866 = vmatpush.bf16.msrb.mxu2 %v853_v30  ;;  %v761_v9 = vsub.f32 1.0, %v745_v15  ;;  %v763_v21 = vsub.f32 1.0, %v747_v39  ;;  %v566_v20 = vmul.f32 %v550_v11, %v1794_v3  ;;  %v1835_v2 = vsel %vm373_vm7, %v2116_v29, %v371_v22 }
 0x10c   :  { %vm779_vm9 = vcmp.ge.f32.partialorder %v2117_v56, 0.0  ;;  %v580_v41 = vadd.f32 1.4214138, %v564_v0  ;;  %vm403_vm10 = vcmp.eq.f32.partialorder %v402_v42, 8.507059e+37  ;;  %v533_v12 = vmul.f32 1.0614054, %v1835_v2 }
 0x10d   :  { %vm323_vm11 = vweird.f32 %v2118_v60  ;;  %v793_v50 = vsub.f32 0.0, %v761_v9  ;;  %v795_v58 = vsub.f32 0.0, %v763_v21  ;;  %v582_v8 = vadd.f32 1.4214138, %v566_v20 }
 0x10e   :  { %v1841_v35 = vsel %vm403_vm10, %v2119_v63, %v401_v33  ;;  %v596_v16 = vmul.f32 %v580_v41, %v1786_v48  ;;  %v549_v26 = vadd.f32 -1.4531521, %v533_v12  ;;  %v2121_v38 = vsub.f32 1.0, %v2120_v43  ;;  %vm1877_vm0 = vmor %vm323_vm11, %vm324_vm8  ;;  %v2135_v41 = vld [vmem:[#allocation55_spill] sm:$0xff] }
 0x10f   :  { %v535_v7 = vmul.f32 1.0614054, %v1841_v35  ;;  %v219_v18 = vmul.f32 0.5, %v2123_v1  ;;  %v809_v24 = vsel %vm777_vm4, %v761_v9, %v793_v50  ;;  %v811_v27 = vsel %vm779_vm9, %v763_v21, %v795_v58  ;;  %v2133_v21 = vld [vmem:[#allocation47_spill] sm:$0xff] }
 0x110   :  { %v291_v61 = vmul.f32 %v2122_v4, %v2121_v38  ;;  %v598_v34 = vmul.f32 %v582_v8, %v1794_v3  ;;  %v825_v62 = vadd.f32 1.0, %v809_v24  ;;  %v827_v45 = vadd.f32 1.0, %v811_v27  ;;  %v2136_v50 = vld [vmem:[#allocation31_spill] sm:$0xff]  ;;  %v2137_v8 = vld [vmem:[#allocation37_spill] sm:$0xff]  ;;  %v2142_v27 = vld [vmem:[#allocation32_spill] sm:$0xff] }
 0x111   :  { %v612_v32 = vadd.f32 -0.28449672, %v596_v16  ;;  %v551_v37 = vadd.f32 -1.4531521, %v535_v7  ;;  %v565_v55 = vmul.f32 %v549_v26, %v1835_v2  ;;  %vm294_vm12 = vweird.f32 %v2122_v4  ;;  %v2138_v26 = vld [vmem:[#allocation24_spill] sm:$0xff] }
 0x112   :  { %v614_v53 = vadd.f32 -0.28449672, %v598_v34  ;;  %v292_v47 = vadd.f32 %v2122_v4, %v291_v61  ;;  %v841_v44 = vmul.f32 %v825_v62, %v2124_v59  ;;  %v843_v5 = vmul.f32 %v827_v45, %v219_v18  ;;  %v2139_v61 = vld [vmem:[#allocation33_spill] sm:$0xff]  ;;  %v2141_v18 = vld [vmem:[#allocation28_spill] sm:$0xff] }
 0x113   :  { %v628_v31 = vmul.f32 %v612_v32, %v1786_v48  ;;  %v567_v52 = vmul.f32 %v551_v37, %v1841_v35  ;;  %v581_v23 = vadd.f32 1.4214138, %v565_v55  ;;  %vm293_vm13 = vweird.f32 %v2125_v19  ;;  %v2143_v32 = vld [vmem:[#allocation23_spill] sm:$0xff]  ;;  %v2144_v37 = vld [vmem:[#allocation41_spill] sm:$0xff] }
 0x114   :  { %v630_v36 = vmul.f32 %v614_v53, %v1794_v3  ;;  %v297_v54 = vand.u32 2147483647, %v2125_v19  ;;  %v854_v17 = vpack.c.bf16 %v843_v5, %v841_v44  ;;  %vm1861_vm14 = vmor %vm293_vm13, %vm294_vm12  ;;  %v299_v51 = vand.u32 2147483648, %v2125_v19 }
 0x115   :  { %v644_v10 = vadd.f32 0.2548296, %v628_v31  ;;  %v583_v6 = vadd.f32 1.4214138, %v567_v52  ;;  %vm772_vm15 = vcmp.ge.f32.partialorder %v2128_v25, 0.0  ;;  %v597_v22 = vmul.f32 %v581_v23, %v1835_v2  ;;  %v2145_v23 = vld [vmem:[#allocation53_spill] sm:$0xff] }
 0x116   :  { %v646_v40 = vadd.f32 0.2548296, %v630_v36  ;;  %v296_v14 = vsel %vm1861_vm14, %v2122_v4, %v292_v47  ;;  %v322_v57 = vadd.f32 %v2115_v46, %v2129_v49  ;;  %vm774_vm1 = vcmp.ge.f32.partialorder %v2132_v28, 0.0  ;;  %879 = vmatpush.bf16.msrb.mxu3 %v854_v17  ;;  %v2150_v49 = vld [vmem:[#allocation45_spill] sm:$0xff] }
 0x117   :  { %v660_v15 = vmul.f32 %v644_v10, %v1786_v48  ;;  %v599_v39 = vmul.f32 %v583_v6, %v1841_v35  ;;  %v300_v11 = vor.u32 1.1754944e-38, %v299_v51  ;;  %v327_v0 = vand.u32 2147483647, %v2118_v60  ;;  %v2134_v48 = vld [vmem:[#allocation29_spill] sm:$0xff]  ;;  %v2148_v10 = vld [vmem:[#allocation58_spill] sm:$0xff]  ;;  %v2149_v51 = vld [vmem:[#allocation40_spill] sm:$0xff] }
 0x118   :  { %v662_v33 = vmul.f32 %v646_v40, %v1794_v3  ;;  %v613_v42 = vadd.f32 -0.28449672, %v597_v22  ;;  %vm298_vm2 = vcmp.eq.f32.partialorder %v297_v54, 8.507059e+37  ;;  %v326_v9 = vsel %vm1877_vm0, %v2115_v46, %v322_v57 }
 0x119   :  { %v740_v20 = vmul.f32 %v2133_v21, %v660_v15  ;;  %v615_v29 = vadd.f32 -0.28449672, %v599_v39  ;;  %v1890_v56 = vsel %vm298_vm2, %v300_v11, %v296_v14  ;;  %vm328_vm3 = vcmp.eq.f32.partialorder %v327_v0, 8.507059e+37  ;;  %v2151_v0 = vld [vmem:[#allocation42_spill] sm:$0xff] }
 0x11a   :  { %vm339_vm4 = vweird.f32 %v2134_v48  ;;  %v742_v12 = vmul.f32 %v2135_v41, %v662_v33  ;;  %v629_v60 = vmul.f32 %v613_v42, %v1835_v2  ;;  %v1896_v3 = vsel %vm328_vm3, %v2136_v50, %v326_v9 }
 0x11b   :  { %v528_v58 = vmul.f32 1.0614054, %v1890_v56  ;;  %v1900_v63 = vmul.f32 0.5, %v2137_v8  ;;  %v756_v46 = vsub.f32 1.0, %v740_v20  ;;  %v631_v16 = vmul.f32 %v615_v29, %v1841_v35 }
 0x11c   :  { %v530_v7 = vmul.f32 1.0614054, %v1896_v3  ;;  %vm338_vm5 = vweird.f32 %v2138_v26  ;;  %v758_v43 = vsub.f32 1.0, %v742_v12  ;;  %v645_v38 = vadd.f32 0.2548296, %v629_v60 }
 0x11d   :  { %v544_v4 = vadd.f32 -1.4531521, %v528_v58  ;;  %v2140_v1 = vsub.f32 1.0, %v2139_v61  ;;  %vm773_vm6 = vcmp.ge.f32.partialorder %v2142_v27, 0.0  ;;  %v788_v34 = vsub.f32 0.0, %v756_v46  ;;  %vm1942_vm12 = vmor %vm338_vm5, %vm339_vm4 }
 0x11e   :  { %v647_v62 = vadd.f32 0.2548296, %v631_v16  ;;  %v546_v45 = vadd.f32 -1.4531521, %v530_v7  ;;  %vm308_vm7 = vweird.f32 %v2143_v32  ;;  %vm775_vm8 = vcmp.ge.f32.partialorder %v2144_v37, 0.0 }
 0x11f   :  { %v306_v24 = vmul.f32 %v2141_v18, %v2140_v1  ;;  %v790_v53 = vsub.f32 0.0, %v758_v43  ;;  %v661_v55 = vmul.f32 %v645_v38, %v1835_v2  ;;  %v560_v47 = vmul.f32 %v544_v4, %v1890_v56  ;;  %v2154_v4 = vld [vmem:[#allocation20_spill] sm:$0xff]  ;;  %v2155_v1 = vld [vmem:[#allocation43_spill] sm:$0xff] }
 0x120   :  { %v804_v44 = vsel %vm772_vm15, %v756_v46, %v788_v34  ;;  %v663_v5 = vmul.f32 %v647_v62, %v1841_v35  ;;  %v562_v31 = vmul.f32 %v546_v45, %v1896_v3  ;;  %vm309_vm9 = vweird.f32 %v2141_v18 }
 0x121   :  { %v307_v59 = vadd.f32 %v2141_v18, %v306_v24  ;;  %v806_v52 = vsel %vm774_vm1, %v758_v43, %v790_v53  ;;  %v820_v36 = vadd.f32 1.0, %v804_v44  ;;  %v741_v19 = vmul.f32 %v2145_v23, %v661_v55  ;;  %vm1922_vm10 = vmor %vm308_vm7, %vm309_vm9 }
 0x122   :  { %v576_v2 = vadd.f32 1.4214138, %v560_v47  ;;  %v822_v17 = vadd.f32 1.0, %v806_v52  ;;  %v743_v6 = vmul.f32 %v2148_v10, %v663_v5  ;;  %v578_v13 = vadd.f32 1.4214138, %v562_v31 }
 0x123   :  { %v311_v35 = vsel %vm1922_vm10, %v2141_v18, %v307_v59  ;;  %v836_v25 = vmul.f32 %v820_v36, %v2149_v51  ;;  %v757_v40 = vsub.f32 1.0, %v741_v19  ;;  %v312_v14 = vand.u32 2147483647, %v2143_v32  ;;  %v2159_v59 = vld [vmem:[#allocation34_spill] sm:$0xff]  ;;  %v2160_v36 = vld [vmem:[#allocation35_spill] sm:$0xff] }
 0x124   :  { %v592_v22 = vmul.f32 %v576_v2, %v1890_v56  ;;  %v838_v57 = vmul.f32 %v822_v17, %v2150_v49  ;;  %v759_v30 = vsub.f32 1.0, %v743_v6  ;;  %v594_v28 = vmul.f32 %v578_v13, %v1896_v3  ;;  %v2162_v51 = vld [vmem:[#allocation14_spill] sm:$0xff] }
 0x125   :  { %v314_v15 = vand.u32 2147483648, %v2143_v32  ;;  %v789_v39 = vsub.f32 0.0, %v757_v40  ;;  %vm313_vm11 = vcmp.eq.f32.partialorder %v312_v14, 8.507059e+37  ;;  %v337_v33 = vadd.f32 %v2134_v48, %v2151_v0  ;;  %v2157_v32 = vld [vmem:[#allocation19_spill] sm:$0xff]  ;;  %v2163_v14 = vld [vmem:[#allocation12_spill] sm:$0xff] }
 0x126   :  { %v608_v11 = vadd.f32 -0.28449672, %v592_v22  ;;  %v851_v9 = vpack.c.bf16 %v838_v57, %v836_v25  ;;  %v791_v21 = vsub.f32 0.0, %v759_v30  ;;  %v610_v20 = vadd.f32 -0.28449672, %v594_v28  ;;  %v2164_v28 = vld [vmem:[#allocation11_spill] sm:$0xff] }
 0x127   :  { %v315_v29 = vor.u32 1.1754944e-38, %v314_v15  ;;  %v805_v41 = vsel %vm773_vm6, %v757_v40, %v789_v39  ;;  %v341_v60 = vsel %vm1942_vm12, %v2134_v48, %v337_v33  ;;  %v342_v50 = vand.u32 2147483647, %v2138_v26  ;;  %v2156_v48 = vld [vmem:[#allocation38_spill] sm:$0xff] }
 0x128   :  { %v624_v12 = vmul.f32 %v608_v11, %v1890_v56  ;;  %867 = vmatpush.bf16.msrb.mxu2 %v851_v9  ;;  %v807_v58 = vsel %vm775_vm8, %v759_v30, %v791_v21  ;;  %v821_v8 = vadd.f32 1.0, %v805_v41  ;;  %v626_v46 = vmul.f32 %v610_v20, %v1896_v3 }
 0x129   :  { %v316_v16 = vsel %vm313_vm11, %v315_v29, %v311_v35  ;;  %v823_v7 = vadd.f32 1.0, %v807_v58  ;;  %vm343_vm13 = vcmp.eq.f32.partialorder %v342_v50, 8.507059e+37  ;;  %v675_v61 = vsub.f32 0.0, %v2154_v4  ;;  %v848_v58 = vld [vmem:[%s1995_s5] sm:$0xf]  ;;  %s892_s5 = sld [smem:[#allocation2]] }
 0x12a   :  { %v640_v43 = vadd.f32 0.2548296, %v624_v12  ;;  %v529_v38 = vmul.f32 1.0614054, %v316_v16  ;;  %v837_v18 = vmul.f32 %v821_v8, %v2155_v1  ;;  %v642_v24 = vadd.f32 0.2548296, %v626_v46 }
 0x12b   :  { %v346_v27 = vsel %vm343_vm13, %v2156_v48, %v341_v60  ;;  %v839_v26 = vmul.f32 %v823_v7, %v1900_v63  ;;  %v2158_v37 = vsub.f32 0.0, %v2157_v32  ;;  %v691_v52 = vmul.f32 %v675_v61, %v2154_v4  ;;  %v2165_v4 = vld [vmem:[#allocation17_spill] sm:$0xff]  ;;  %v2166_v1 = vld [vmem:[#allocation18_spill] sm:$0xff] }
 0x12c   :  { %v656_v34 = vmul.f32 %v640_v43, %v1890_v56  ;;  %v531_v62 = vmul.f32 1.0614054, %v346_v27  ;;  %v545_v45 = vadd.f32 -1.4531521, %v529_v38  ;;  %v658_v55 = vmul.f32 %v642_v24, %v1896_v3  ;;  %v2161_v3 = vld [vmem:[#allocation15_spill] sm:$0xff] }
 0x12d   :  { %v689_v53 = vmul.f32 %v2158_v37, %v2157_v32  ;;  %v852_v47 = vpack.c.bf16 %v839_v26, %v837_v18  ;;  %v710_v13 = vmul.f32 1.442695, %v691_v52  ;;  %vm768_vm14 = vcmp.ge.f32.partialorder %v2161_v3, 0.0  ;;  %v2167_v18 = vld [vmem:[#allocation13_spill] sm:$0xff]  ;;  %v2168_v26 = vld [vmem:[#allocation16_spill] sm:$0xff] }
 0x12e   :  { %v736_v44 = vmul.f32 %v2159_v59, %v656_v34  ;;  %v547_v5 = vadd.f32 -1.4531521, %v531_v62  ;;  %v561_v31 = vmul.f32 %v545_v45, %v316_v16  ;;  %v738_v23 = vmul.f32 %v2160_v36, %v658_v55  ;;  %v1044_v36 = vld [vmem:[%s1991_s1] sm:$0xff] }
 0x12f   :  { %880 = vmatpush.bf16.msrb.mxu3 %v852_v47  ;;  %v706_v2 = vmul.f32 1.442695, %v689_v53  ;;  %vm770_vm15 = vcmp.ge.f32.partialorder %v2162_v51, 0.0  ;;  %v208_v49 = vmul.f32 0.5, %v2163_v14  ;;  %v210_v15 = vmul.f32 0.5, %v2164_v28 }
 0x130   :  { %v752_v63 = vsub.f32 1.0, %v736_v44  ;;  %v563_v56 = vmul.f32 %v547_v5, %v346_v27  ;;  %v577_v19 = vadd.f32 1.4214138, %v561_v31  ;;  %v754_v54 = vsub.f32 1.0, %v738_v23 }
 0x131   :  { %1040 = vpow2.f32 %v706_v2  ;;  %vm857_vm0 = vcmask 523264   ;;  %vm769_vm1 = vcmp.ge.f32.partialorder %v2165_v4, 0.0  ;;  %vm771_vm2 = vcmp.ge.f32.partialorder %v2166_v1, 0.0  ;;  %v1045_v2 = vld [vmem:[%s1991_s1 + $0x8] sm:$0xff] }
 0x132   :  { %v784_v17 = vsub.f32 0.0, %v752_v63  ;;  %v579_v10 = vadd.f32 1.4214138, %v563_v56  ;;  %v593_v6 = vmul.f32 %v577_v19, %v316_v16  ;;  %v786_v35 = vsub.f32 0.0, %v754_v54 }
 0x133   :  { %1042 = vpow2.f32 %v710_v13  ;;  %v209_v24 = vmul.f32 0.5, %v2167_v18  ;;  %v211_v34 = vmul.f32 0.5, %v2168_v26  ;;  %v887_v53 = vlaneseq }
 0x134   :  { %v800_v25 = vsel %vm768_vm14, %v752_v63, %v784_v17  ;;  %v595_v40 = vmul.f32 %v579_v10, %v346_v27  ;;  %v609_v22 = vadd.f32 -0.28449672, %v593_v6  ;;  %v802_v57 = vsel %vm770_vm15, %v754_v54, %v786_v35 }
 0x135   :  { %v816_v30 = vadd.f32 1.0, %v800_v25  ;;  %v818_v39 = vadd.f32 1.0, %v802_v57  ;;  %v888_v55 = vshrl.u32 %v887_v53, 7  ;;  %v893_v47 = vstv %s892_s5 }
 0x136   :  { %v611_v11 = vadd.f32 -0.28449672, %v595_v40  ;;  %v625_v0 = vmul.f32 %v609_v22, %v316_v16  ;;  %v899_v44 = vstv %s951_s20 }
 0x137   :  { %v832_v33 = vmul.f32 %v816_v30, %v208_v49  ;;  %v834_v42 = vmul.f32 %v818_v39, %v210_v15  ;;  %v1041_v12 = vpop.eup %1040  ;;  %vm890_vm3 = vcmp.lt.s32.totalorder %v888_v55, 4  ;;  %vm895_vm4 = vcmp.ge.s32.totalorder %v888_v55, 4 }
 0x138   :  { %v627_v9 = vmul.f32 %v611_v11, %v346_v27  ;;  %v641_v21 = vadd.f32 0.2548296, %v625_v0  ;;  %v894_v59 = vsel %vm890_vm3, %v893_v47, 0.0 }
 0x139   :  { %v849_v20 = vpack.c.bf16 %v834_v42, %v832_v33  ;;  %v1043_v8 = vpop.eup %1042  ;;  %v900_v5 = vsel %vm895_vm4, %v899_v44, %v894_v59 }
 0x13a   :  { %v643_v29 = vadd.f32 0.2548296, %v627_v9  ;;  %v657_v41 = vmul.f32 %v641_v21, %v316_v16 }
 0x13b   :  { %868 = vmatpush.bf16.msrb.mxu2 %v849_v20 }
 0x13c   :  { %v659_v60 = vmul.f32 %v643_v29, %v346_v27  ;;  %v737_v50 = vmul.f32 %v1041_v12, %v657_v41 }
 0x13e   :  { %v739_v46 = vmul.f32 %v1043_v8, %v659_v60  ;;  %v753_v7 = vsub.f32 1.0, %v737_v50  ;;  %949 = vmatmul.msk.bf16.vlgmr.msrb.gmra.mxu2 %vm857_vm0, %v848_v58 }
 0x140   :  { %v755_v43 = vsub.f32 1.0, %v739_v46  ;;  %v785_v38 = vsub.f32 0.0, %v753_v7 }
 0x142   :  { %v787_v61 = vsub.f32 0.0, %v755_v43  ;;  %v801_v16 = vsel %vm769_vm1, %v753_v7, %v785_v38 }
 0x143   :  { %v817_v48 = vadd.f32 1.0, %v801_v16 }
 0x144   :  { %v803_v27 = vsel %vm771_vm2, %v755_v43, %v787_v61 }
 0x145   :  { %v819_v62 = vadd.f32 1.0, %v803_v27  ;;  %v833_v45 = vmul.f32 %v817_v48, %v209_v24 }
 0x147   :  { %v835_v32 = vmul.f32 %v819_v62, %v211_v34 }
 0x149   :  { %v850_v37 = vpack.c.bf16 %v835_v32, %v833_v45 }
 0x14b   :  { %881 = vmatpush.bf16.msrb.mxu3 %v850_v37 }
 0x14e   :  { %950 = vmatmul.msk.bf16.vlgmr.msrb.gmra.mxu3 %vm857_vm0, %v848_v58 }
 0x1c1   :  { %v870_v31 = vpop.f32.mrf.mxu2 }
 0x1c2   :  { %v901_v52 = vmul.f32 %v900_v5, %v870_v31 }
 0x1c4   :  { %v903_v23 = vsub.f32 %v1044_v36, %v901_v52 }
 0x1c6   :  { %905 = vst [vmem:[#allocation7] sm:$0xff] %v903_v23 }
 0x1c9   :  { %v872_v63 = vpop.f32.mrf.mxu2 }
 0x1d1   :  { %v883_v56 = vpop.f32.mrf.mxu3 }
 0x1d2   :  { %v902_v19 = vmul.f32 %v900_v5, %v883_v56 }
 0x1d4   :  { %v904_v54 = vsub.f32 %v1045_v2, %v902_v19 }
 0x1d6   :  { %906 = vst [vmem:[#allocation7 + $0x8] sm:$0xff] %v904_v54 }
 0x1d7   :  { %917 = dma.vmem_to_hbm [thread:$0]  %s913_s24, 256, %s915_s27, [#allocation4]  }
 0x1d9   :  { %v885_v17 = vpop.f32.mrf.mxu3 }
 0x1da   :  { %1110 = dma.done.wait [#allocation4], 256  }
 0x1db   :  { %1111 = vsyncadd [#allocation4], 4294967040 }
 0x1dc   :  { %922 = vsyncpa [#allocation3], 1 }
 0x1dd   :  { %923 = vsyncpa [#allocation4], 1 }
 0x1de   :  { %924 = vsyncpa [#allocation5], 1 }

</bundles_post_ra>
